<compile_context>
chip_gen: v6e
topology: v6e:2x2x1
jax: 0.10.0
libtpu: 0.0.40
codegen_flags: <defaults>
</compile_context>

<pallas_src>
import jax
import jax.numpy as jnp
from jax import lax
from jax.experimental import pallas as pl
from jax.experimental.pallas import tpu as pltpu

EMB_SIZE = 128
HIDDEN_SIZE = 256
OUTPUT_SIZE = 256
IN_FEATS = EMB_SIZE * 2          # 256
MID_FEATS = HIDDEN_SIZE * 2      # 512

VPAD = 128                       # each (tiny) folded table is padded to 128 rows
K1 = 2 * VPAD                    # contraction dim of the fused lookup-matmul


def _fused_kernel(ids_ref, table_ref, b1_ref, w2_ref, b2_ref, o_ref):
    """One batch tile of the full forward pass.

    ids_ref:   (tile_n, 2)   int32   -- genre id, key id
    table_ref: (256, 512)    bf16    -- [t0_pad ; t1_pad]  (W1 folded into embeddings)
    b1_ref:    (1, 512)      f32
    w2_ref:    (512, 256)    bf16
    b2_ref:    (1, 256)      f32
    o_ref:     (tile_n, 256) f32
    """
    tn = ids_ref.shape[0]
    ids = ids_ref[...]                                    # (tn, 2) int32
    id0 = ids[:, 0:1]                                     # (tn, 1)
    id1 = ids[:, 1:2] + VPAD                              # offset into second table

    # Combined one-hot over both tables: lanes [0,128) select from t0 via id0,
    # lanes [128,256) select from t1 via id1 + 128.
    iota = lax.broadcasted_iota(jnp.int32, (tn, K1), 1)
    sel = jnp.where(iota < VPAD, id0, id1)                # (tn, 256)
    onehot = (iota == sel).astype(jnp.bfloat16)           # exact 0/1 in bf16

    # Layer 1 (gather + W1 + gather + W1 already folded) -> bias -> ReLU (f32).
    h = jnp.dot(onehot, table_ref[...], preferred_element_type=jnp.float32)
    h = jnp.maximum(h + b1_ref[...], 0.0)                 # (tn, 512) f32

    # Layer 2 on the MXU in bf16, accumulate in f32.
    y = jnp.dot(h.astype(jnp.bfloat16), w2_ref[...],
                preferred_element_type=jnp.float32)
    o_ref[...] = (y + b2_ref[...]).astype(o_ref.dtype)


def prepare_params(params):
    """Fold W1 into the embedding tables and cast matmul operands to bf16."""
    genre, keyt = params["genre_emb"], params["key_emb"]
    w1, b1, w2, b2 = params["w1"], params["b1"], params["w2"], params["b2"]

    t0 = genre @ w1[:EMB_SIZE, :]                          # (V0, 512) f32
    t1 = keyt @ w1[EMB_SIZE:, :]                           # (V1, 512) f32
    t0p = jnp.zeros((VPAD, MID_FEATS), jnp.float32).at[: t0.shape[0]].set(t0)
    t1p = jnp.zeros((VPAD, MID_FEATS), jnp.float32).at[: t1.shape[0]].set(t1)
    table = jnp.concatenate([t0p, t1p], axis=0).astype(jnp.bfloat16)  # (256, 512)

    return {
        "table": table,
        "b1": b1.reshape(1, MID_FEATS).astype(jnp.float32),
        "w2": w2.astype(jnp.bfloat16),
        "b2": b2.reshape(1, OUTPUT_SIZE).astype(jnp.float32),
    }


def header_embedding_forward(input_tensor, prepared, *, tile_n=256):
    """input_tensor: (N, 4) int32; returns (N, 256) float32."""
    ids = input_tensor[:, :2].astype(jnp.int32)            # (N, 2)
    n = ids.shape[0]

    if n >= tile_n:
        n_pad = ((n + tile_n - 1) // tile_n) * tile_n
    else:
        tile_n = max(8, ((n + 7) // 8) * 8)                # tiny batch: one tile
        n_pad = tile_n
    if n_pad != n:
        ids = jnp.pad(ids, ((0, n_pad - n), (0, 0)))       # pad rows use id 0 (valid)

    grid = (n_pad // tile_n,)
    out = pl.pallas_call(
        _fused_kernel,
        out_shape=jax.ShapeDtypeStruct((n_pad, OUTPUT_SIZE), jnp.float32),
        grid_spec=pltpu.PrefetchScalarGridSpec(
            num_scalar_prefetch=0,
            grid=grid,
            in_specs=[
                pl.BlockSpec((tile_n, 2), lambda i: (i, 0)),
                pl.BlockSpec((K1, MID_FEATS), lambda i: (0, 0)),
                pl.BlockSpec((1, MID_FEATS), lambda i: (0, 0)),
                pl.BlockSpec((MID_FEATS, OUTPUT_SIZE), lambda i: (0, 0)),
                pl.BlockSpec((1, OUTPUT_SIZE), lambda i: (0, 0)),
            ],
            out_specs=pl.BlockSpec((tile_n, OUTPUT_SIZE), lambda i: (i, 0)),
        ),
        compiler_params=pltpu.CompilerParams(
            dimension_semantics=("parallel",)),   # lets v7x shard tiles over 2 TCs
    )(ids, prepared["table"], prepared["b1"], prepared["w2"], prepared["b2"])
    return out[:n]


def init_params(key, vocab_sizes=(10, 12)):
    k0, k1, k2, k3, k4, k5 = jax.random.split(key, 6)
    v_genre, v_key = vocab_sizes
    genre_emb = jax.random.normal(k0, (v_genre, EMB_SIZE), jnp.float32)
    key_emb = jax.random.normal(k1, (v_key, EMB_SIZE), jnp.float32)
    lim1 = 1.0 / jnp.sqrt(IN_FEATS)
    lim2 = 1.0 / jnp.sqrt(MID_FEATS)
    w1 = jax.random.uniform(k2, (IN_FEATS, MID_FEATS), jnp.float32, -lim1, lim1)
    b1 = jax.random.uniform(k3, (1, MID_FEATS), jnp.float32, -lim1, lim1)
    w2 = jax.random.uniform(k4, (MID_FEATS, OUTPUT_SIZE), jnp.float32, -lim2, lim2)
    b2 = jax.random.uniform(k5, (1, OUTPUT_SIZE), jnp.float32, -lim2, lim2)
    return {"genre_emb": genre_emb, "key_emb": key_emb,
            "w1": w1, "b1": b1, "w2": w2, "b2": b2}


def reference_f32(input_tensor, params):
    """Straight f32 re-statement of the PyTorch forward."""
    genre_emb = params["genre_emb"][input_tensor[:, 0]]
    key_emb = params["key_emb"][input_tensor[:, 1]]
    emb = jnp.concatenate([genre_emb, key_emb], axis=1)
    h = jnp.maximum(emb @ params["w1"] + params["b1"][0], 0.0)
    return h @ params["w2"] + params["b2"][0]


def reference_bf16(input_tensor, prepared):
    """Same math as the kernel (folded tables + bf16 operands, f32 accumulate)."""
    ids = input_tensor[:, :2].astype(jnp.int32)
    t = prepared["table"].astype(jnp.float32)
    h = t[ids[:, 0]] + t[ids[:, 1] + VPAD] + prepared["b1"][0]
    h = jnp.maximum(h, 0.0)
    hb = h.astype(jnp.bfloat16).astype(jnp.float32)
    w2 = prepared["w2"].astype(jnp.float32)
    return hb @ w2 + prepared["b2"][0]


def _make_inputs(key, n, vocab_sizes):
    col0 = jax.random.randint(key, (n, 1), 0, vocab_sizes[0], dtype=jnp.int32)
    col1 = jax.random.randint(jax.random.fold_in(key, 1), (n, 1), 0,
                              vocab_sizes[1], dtype=jnp.int32)
    col23 = jnp.zeros((n, 2), jnp.int32)                   # unused by the forward
    return jnp.concatenate([col0, col1, col23], axis=1)    # (n, 4)


if __name__ == "__main__":
    key = jax.random.PRNGKey(0)
    kp, kx = jax.random.split(key)

    vocab_sizes = (10, 12)
    params = init_params(kp, vocab_sizes)
    prepared = prepare_params(params)

    # Small, odd batch (exercises tail padding, single tile) and a multi-tile batch.
    for tag, n in (("small", 10), ("multi_tile", 525)):
        inp = _make_inputs(jax.random.fold_in(kx, n), n, vocab_sizes)

        out = header_embedding_forward(inp, prepared)
        out = jax.block_until_ready(out)
        assert out.shape == (n, OUTPUT_SIZE), (tag, out.shape)

        # Tight check against the exact bf16-folded math the kernel implements.
        ref_b = reference_bf16(inp, prepared)
        assert jnp.allclose(out, ref_b, atol=2e-3, rtol=2e-3), \
            (tag, float(jnp.max(jnp.abs(out - ref_b))))

        # Looser check against the original f32 module semantics (bf16 rounding).
        ref_f = reference_f32(inp, params)
        assert jnp.allclose(out, ref_f, atol=1e-1, rtol=5e-2), \
            (tag, float(jnp.max(jnp.abs(out - ref_f))))

    print("KERNEL_OK")
</pallas_src>

<mosaic_0001>
module attributes {stable_mosaic.version = 11 : i64} {
  func.func @_fused_kernel(%arg0: i32, %arg1: memref<16x2xi32, #tpu.memory_space<vmem>>, %arg2: memref<256x512xbf16, #tpu.memory_space<vmem>>, %arg3: memref<1x512xf32, #tpu.memory_space<vmem>>, %arg4: memref<512x256xbf16, #tpu.memory_space<vmem>>, %arg5: memref<1x256xf32, #tpu.memory_space<vmem>>, %arg6: memref<16x256xf32, #tpu.memory_space<vmem>>) attributes {dimension_semantics = [#tpu.dimension_semantics<parallel>], iteration_bounds = array<i64: 1>, scalar_prefetch = 0 : i64, scratch_operands = 0 : i64, tpu.core_type = #tpu.core_type<tc>, window_params = [{transform_indices = @transform_0, window_bounds = array<i64: 16, 2>}, {pipeline_mode = #tpu.pipeline_mode<synchronous>, transform_indices = @transform_1, window_bounds = array<i64: 256, 512>}, {pipeline_mode = #tpu.pipeline_mode<synchronous>, transform_indices = @transform_2, window_bounds = array<i64: 1, 512>}, {pipeline_mode = #tpu.pipeline_mode<synchronous>, transform_indices = @transform_3, window_bounds = array<i64: 512, 256>}, {pipeline_mode = #tpu.pipeline_mode<synchronous>, transform_indices = @transform_4, window_bounds = array<i64: 1, 256>}, {transform_indices = @transform_5, window_bounds = array<i64: 16, 256>}]} {
    %c0 = arith.constant 0 : index
    %c0_0 = arith.constant 0 : index
    %0 = vector.load %arg1[%c0, %c0_0] : memref<16x2xi32, #tpu.memory_space<vmem>>, vector<16x2xi32>
    %1 = vector.extract_strided_slice %0 {offsets = [0, 0], sizes = [16, 1], strides = [1, 1]} : vector<16x2xi32> to vector<16x1xi32>
    %2 = vector.extract_strided_slice %0 {offsets = [0, 1], sizes = [16, 1], strides = [1, 1]} : vector<16x2xi32> to vector<16x1xi32>
    %c128_i32 = arith.constant 128 : i32
    %3 = vector.broadcast %c128_i32 : i32 to vector<16x1xi32>
    %4 = arith.addi %2, %3 : vector<16x1xi32>
    %5 = tpu.iota {dimensions = array<i32: 1>} : vector<16x256xi32>
    %c128_i32_1 = arith.constant 128 : i32
    %6 = vector.broadcast %c128_i32_1 : i32 to vector<16x256xi32>
    %7 = arith.cmpi slt, %5, %6 : vector<16x256xi32>
    %8 = vector.shape_cast %1 : vector<16x1xi32> to vector<16x1xi32>
    %9 = vector.broadcast %8 : vector<16x1xi32> to vector<16x256xi32>
    %10 = vector.shape_cast %4 : vector<16x1xi32> to vector<16x1xi32>
    %11 = vector.broadcast %10 : vector<16x1xi32> to vector<16x256xi32>
    %12 = arith.select %7, %9, %11 : vector<16x256xi1>, vector<16x256xi32>
    %13 = arith.cmpi eq, %5, %12 : vector<16x256xi32>
    %14 = arith.extui %13 : vector<16x256xi1> to vector<16x256xi32>
    %15 = arith.sitofp %14 : vector<16x256xi32> to vector<16x256xf32>
    %16 = arith.truncf %15 : vector<16x256xf32> to vector<16x256xbf16>
    %c0_2 = arith.constant 0 : index
    %c0_3 = arith.constant 0 : index
    %17 = vector.load %arg2[%c0_2, %c0_3] : memref<256x512xbf16, #tpu.memory_space<vmem>>, vector<256x512xbf16>
    %cst = arith.constant dense<0.000000e+00> : vector<16x512xf32>
    %18 = tpu.matmul %16, %17, %cst {dimension_numbers = #tpu.dot_dimension_numbers<[1], [0], [0], [1], [0, 0, 1, 1], [], []>} : vector<16x256xbf16>, vector<256x512xbf16>, vector<16x512xf32> -> vector<16x512xf32>
    %c0_4 = arith.constant 0 : index
    %c0_5 = arith.constant 0 : index
    %19 = vector.load %arg3[%c0_4, %c0_5] : memref<1x512xf32, #tpu.memory_space<vmem>>, vector<1x512xf32>
    %20 = vector.broadcast %19 : vector<1x512xf32> to vector<16x512xf32>
    %21 = arith.addf %18, %20 : vector<16x512xf32>
    %cst_6 = arith.constant 0.000000e+00 : f32
    %22 = vector.broadcast %cst_6 : f32 to vector<16x512xf32>
    %23 = arith.maximumf %21, %22 : vector<16x512xf32>
    %24 = arith.truncf %23 : vector<16x512xf32> to vector<16x512xbf16>
    %c0_7 = arith.constant 0 : index
    %c0_8 = arith.constant 0 : index
    %25 = vector.load %arg4[%c0_7, %c0_8] : memref<512x256xbf16, #tpu.memory_space<vmem>>, vector<512x256xbf16>
    %cst_9 = arith.constant dense<0.000000e+00> : vector<16x256xf32>
    %26 = tpu.matmul %24, %25, %cst_9 {dimension_numbers = #tpu.dot_dimension_numbers<[1], [0], [0], [1], [0, 0, 1, 1], [], []>} : vector<16x512xbf16>, vector<512x256xbf16>, vector<16x256xf32> -> vector<16x256xf32>
    %c0_10 = arith.constant 0 : index
    %c0_11 = arith.constant 0 : index
    %27 = vector.load %arg5[%c0_10, %c0_11] : memref<1x256xf32, #tpu.memory_space<vmem>>, vector<1x256xf32>
    %28 = vector.broadcast %27 : vector<1x256xf32> to vector<16x256xf32>
    %29 = arith.addf %26, %28 : vector<16x256xf32>
    %c0_12 = arith.constant 0 : index
    %c0_13 = arith.constant 0 : index
    %30 = vector.load %arg6[%c0_12, %c0_13] : memref<16x256xf32, #tpu.memory_space<vmem>>, vector<16x256xf32>
    tpu.vector_store %arg6[%c0_12, %c0_13], %29 {strides = array<i32>} : memref<16x256xf32, #tpu.memory_space<vmem>>, vector<16x256xf32>,
    return
  }
  func.func @transform_0(%arg0: i32) -> (i32, i32) {
    %c0_i32 = arith.constant 0 : i32
    %c0_i32_0 = arith.constant 0 : i32
    return %arg0, %c0_i32 : i32, i32
  }
  func.func @transform_1(%arg0: i32) -> (i32, i32) {
    %c0_i32 = arith.constant 0 : i32
    %c0_i32_0 = arith.constant 0 : i32
    %c0_i32_1 = arith.constant 0 : i32
    return %c0_i32, %c0_i32_0 : i32, i32
  }
  func.func @transform_2(%arg0: i32) -> (i32, i32) {
    %c0_i32 = arith.constant 0 : i32
    %c0_i32_0 = arith.constant 0 : i32
    %c0_i32_1 = arith.constant 0 : i32
    return %c0_i32, %c0_i32_0 : i32, i32
  }
  func.func @transform_3(%arg0: i32) -> (i32, i32) {
    %c0_i32 = arith.constant 0 : i32
    %c0_i32_0 = arith.constant 0 : i32
    %c0_i32_1 = arith.constant 0 : i32
    return %c0_i32, %c0_i32_0 : i32, i32
  }
  func.func @transform_4(%arg0: i32) -> (i32, i32) {
    %c0_i32 = arith.constant 0 : i32
    %c0_i32_0 = arith.constant 0 : i32
    %c0_i32_1 = arith.constant 0 : i32
    return %c0_i32, %c0_i32_0 : i32, i32
  }
  func.func @transform_5(%arg0: i32) -> (i32, i32) {
    %c0_i32 = arith.constant 0 : i32
    %c0_i32_0 = arith.constant 0 : i32
    return %arg0, %c0_i32 : i32, i32
  }
}

</mosaic_0001>

<bundles_post_ra>
// kernel: tpu_custom_call.1
= control target key start
LH: loop header
LB: loop body
LE: loop exit
PB: predicated region body
PF: predicated region fallthrough
CT: control target
= control target key end

     0   :  { %10 = vsyncpa [#allocation3], 0  ;;  %s1575_s0 = inlined_call_operand.vmem [shape: s32[16,2], index: 0, kind: input, shape index: {}]   ;;  %s1576_s1 = inlined_call_operand.hbm [shape: bf16[256,512], index: 1, kind: input, shape index: {}]   ;;  %s1577_s2 = inlined_call_operand.vmem [shape: f32[1,512], index: 2, kind: input, shape index: {}]   ;;  %s1578_s3 = inlined_call_operand.hbm [shape: bf16[512,256], index: 3, kind: input, shape index: {}]   ;;  %s1579_s4 = inlined_call_operand.vmem [shape: f32[1,256], index: 4, kind: input, shape index: {}]   ;;  %s1580_s5 = inlined_call_operand.hbm [shape: f32[16,256], index: 5, kind: output, shape index: {}]  }
   0x1   :  { %11 = vsyncpa [#allocation6], 0 }
   0x2   :  { %12 = vsyncpa [#allocation4], 0  ;;  %s1506_s18 = smov [#allocation2]  }
   0x3   :  { %s20_s19 = sshll.u32 %s1506_s18, 4  ;;  %s21_s19 = int_to_ptr.vmem [resolvable:$true] %s20_s19 }
   0x4   :  { %s1448_s20 = scalar_lea.vmem %s21_s19, 8192  ;;  %p1453_p1 = scmp.lt.s32.totalorder %s21_s19, %s21_s19 }
   0x5   :  { %p1449_p0 = scmp.ne.s32.totalorder %s21_s19, %s1448_s20  ;;  %p1454_p2 = scmp.lt.s32.totalorder %s1448_s20, %s1448_s20 }
   0x7   :  { %p1455_p3 = por %p1454_p2, %p1453_p1 }
   0x9   :  { %p1456_p4 = pnand %p1455_p3, %p1449_p0 }
   0xb   :  { %1459 = shalt.err (!%p1456_p4)
}
   0xc   :  { %s1507_s21 = smov 256   ;;  %s1508_s22 = smov 16  }
   0xd   :  { %26 = dma.hbm_to_vmem [thread:$0]  %s1576_s1, 8192, %s21_s19, [#allocation3], %s1507_s21, %s1507_s21, %s1508_s22  }
   0xe   :  { %s1509_s25 = smov [#allocation5]  }
   0xf   :  { %s34_s26 = sshll.u32 %s1509_s25, 4  ;;  %s35_s26 = int_to_ptr.vmem [resolvable:$true] %s34_s26 }
  0x10   :  { %s1468_s27 = scalar_lea.vmem %s35_s26, 8192  ;;  %p1473_p6 = scmp.lt.s32.totalorder %s35_s26, %s35_s26 }
  0x11   :  { %p1469_p5 = scmp.ne.s32.totalorder %s35_s26, %s1468_s27  ;;  %p1474_p7 = scmp.lt.s32.totalorder %s1468_s27, %s1468_s27 }
  0x13   :  { %p1475_p8 = por %p1474_p7, %p1473_p6 }
  0x15   :  { %p1476_p9 = pnand %p1475_p8, %p1469_p5 }
  0x17   :  { %1479 = shalt.err (!%p1476_p9)
}
  0x18   :  { %s1510_s28 = smov 128   ;;  %s1511_s29 = smov 8  }
  0x19   :  { %40 = dma.hbm_to_vmem [thread:$0]  %s1578_s3, 8192, %s35_s26, [#allocation6], %s1510_s28, %s1510_s28, %s1511_s29  }
  0x1a   :  { %1500 = dma.done.wait [#allocation3], 8192  }
  0x1b   :  { %1501 = vsyncadd [#allocation3], 4294959104 }
  0x1c   :  { %1502 = dma.done.wait [#allocation6], 8192  }
  0x1d   :  { %1503 = vsyncadd [#allocation6], 4294959104  ;;  %v1512_v0 = vmov 0   ;;  %v1513_v1 = vmov 1   ;;  %v49_v2 = vld [vmem:[%s1575_s0] sm:$0xff]  ;;  %v50_v3 = vld [vmem:[%s1575_s0 + $0x8] sm:$0xff] }
  0x1e   :  { %1247 = vset.pattern.permute.xlu1 %v1512_v0  ;;  %1246 = vset.pattern.permute.xlu0 %v1513_v1  ;;  %v51_v4 = vadd.s32 128, %v49_v2  ;;  %v1248_v5 = vld [vmem:[#allocation2 + $0xe4] ss:$16 sps:$4 sm:$0xff]   ;;  %v1250_v6 = vld [vmem:[#allocation2 + $0xec] ss:$16 sps:$4 sm:$0xff]   ;;  %v52_v8 = vadd.s32 128, %v50_v3 }
  0x1f   :  { %59 = vperm.xlu1 %1247, %v49_v2   ;;  %v1252_v7 = vld [vmem:[#allocation2 + $0xe0] ss:$16 sps:$4 sm:$0xff]   ;;  %494 = vmatprep.subr.bf16.mxu0 %v1248_v5  ;;  %v1253_v9 = vld [vmem:[#allocation2 + $0xe8] ss:$16 sps:$4 sm:$0xff]   ;;  %v1254_v10 = vld [vmem:[#allocation2 + $0xc4] ss:$16 sps:$4 sm:$0xff]  }
  0x20   :  { %65 = vperm.xlu0 %1246, %v51_v4   ;;  %537 = vmatprep.subr.bf16.mxu1 %v1250_v6  ;;  %v1256_v11 = vld [vmem:[#allocation2 + $0xcc] ss:$16 sps:$4 sm:$0xff]   ;;  %v1258_v12 = vld [vmem:[#allocation2 + $0xc0] ss:$16 sps:$4 sm:$0xff]   ;;  %v1259_v13 = vld [vmem:[#allocation2 + $0xc8] ss:$16 sps:$4 sm:$0xff]  }
  0x21   :  { %495 = vmatpush1.bf16.msra.mxu0 %v1252_v7  ;;  %538 = vmatpush1.bf16.msra.mxu1 %v1253_v9  ;;  %v1260_v14 = vld [vmem:[#allocation2 + $0xa4] ss:$16 sps:$4 sm:$0xff]   ;;  %v1262_v15 = vld [vmem:[#allocation2 + $0xac] ss:$16 sps:$4 sm:$0xff]   ;;  %v1264_v16 = vld [vmem:[#allocation2 + $0xa0] ss:$16 sps:$4 sm:$0xff]  }
  0x22   :  { %496 = vmatprep.subr.bf16.mxu0 %v1254_v10  ;;  %539 = vmatprep.subr.bf16.mxu1 %v1256_v11  ;;  %v1265_v17 = vld [vmem:[#allocation2 + $0xa8] ss:$16 sps:$4 sm:$0xff]   ;;  %v1266_v18 = vld [vmem:[#allocation2 + $0x84] ss:$16 sps:$4 sm:$0xff]   ;;  %v1268_v19 = vld [vmem:[#allocation2 + $0x8c] ss:$16 sps:$4 sm:$0xff]  }
  0x23   :  { %62 = vperm.xlu1 %1247, %v50_v3   ;;  %v1270_v20 = vld [vmem:[#allocation2 + $0x80] ss:$16 sps:$4 sm:$0xff]   ;;  %v1271_v21 = vld [vmem:[#allocation2 + $0x88] ss:$16 sps:$4 sm:$0xff]   ;;  %v1272_v22 = vld [vmem:[#allocation2 + $0x64] ss:$16 sps:$4 sm:$0xff]  }
  0x24   :  { %68 = vperm.xlu0 %1246, %v52_v8   ;;  %v1274_v23 = vld [vmem:[#allocation2 + $0x6c] ss:$16 sps:$4 sm:$0xff]   ;;  %v1276_v24 = vld [vmem:[#allocation2 + $0x60] ss:$16 sps:$4 sm:$0xff]   ;;  %v1277_v25 = vld [vmem:[#allocation2 + $0x68] ss:$16 sps:$4 sm:$0xff]   ;;  %v53_v8 = vlaneseq }
  0x25   :  { %497 = vmatpush1.bf16.msra.mxu0 %v1258_v12  ;;  %540 = vmatpush1.bf16.msra.mxu1 %v1259_v13  ;;  %v1278_v26 = vld [vmem:[#allocation2 + $0x44] ss:$16 sps:$4 sm:$0xff]   ;;  %v1280_v27 = vld [vmem:[#allocation2 + $0x4c] ss:$16 sps:$4 sm:$0xff]   ;;  %v1282_v28 = vld [vmem:[#allocation2 + $0x40] ss:$16 sps:$4 sm:$0xff]  }
  0x26   :  { %498 = vmatprep.subr.bf16.mxu0 %v1260_v14  ;;  %541 = vmatprep.subr.bf16.mxu1 %v1262_v15  ;;  %v1283_v29 = vld [vmem:[#allocation2 + $0x48] ss:$16 sps:$4 sm:$0xff]   ;;  %v1284_v30 = vld [vmem:[#allocation2 + $0x24] ss:$16 sps:$4 sm:$0xff]   ;;  %v1286_v31 = vld [vmem:[#allocation2 + $0x2c] ss:$16 sps:$4 sm:$0xff]  }
  0x27   :  { %v1288_v32 = vld [vmem:[#allocation2 + $0x20] ss:$16 sps:$4 sm:$0xff]   ;;  %v1289_v33 = vld [vmem:[#allocation2 + $0x28] ss:$16 sps:$4 sm:$0xff]   ;;  %v1290_v34 = vld [vmem:[#allocation2 + $0x4] ss:$16 sps:$4 sm:$0xff]  }
  0x28   :  { %v1292_v35 = vld [vmem:[#allocation2 + $0xc] ss:$16 sps:$4 sm:$0xff]   ;;  %v1294_v36 = vld [vmem:[#allocation2] ss:$16 sps:$4 sm:$0xff]   ;;  %v1295_v37 = vld [vmem:[#allocation2 + $0x8] ss:$16 sps:$4 sm:$0xff]  }
  0x29   :  { %499 = vmatpush1.bf16.msra.mxu0 %v1264_v16  ;;  %542 = vmatpush1.bf16.msra.mxu1 %v1265_v17  ;;  %v1296_v38 = vld [vmem:[#allocation2 + $0x1e4] ss:$16 sps:$4 sm:$0xff]   ;;  %v1298_v39 = vld [vmem:[#allocation2 + $0x1ec] ss:$16 sps:$4 sm:$0xff]   ;;  %v1300_v40 = vld [vmem:[#allocation2 + $0x1e0] ss:$16 sps:$4 sm:$0xff]  }
  0x2a   :  { %500 = vmatprep.subr.bf16.mxu0 %v1266_v18  ;;  %543 = vmatprep.subr.bf16.mxu1 %v1268_v19  ;;  %v1301_v41 = vld [vmem:[#allocation2 + $0x1e8] ss:$16 sps:$4 sm:$0xff]   ;;  %v1302_v42 = vld [vmem:[#allocation2 + $0x1c4] ss:$16 sps:$4 sm:$0xff]   ;;  %v1304_v43 = vld [vmem:[#allocation2 + $0x1cc] ss:$16 sps:$4 sm:$0xff]  }
  0x2b   :  { %v1306_v44 = vld [vmem:[#allocation2 + $0x1c0] ss:$16 sps:$4 sm:$0xff]   ;;  %v1307_v45 = vld [vmem:[#allocation2 + $0x1c8] ss:$16 sps:$4 sm:$0xff]   ;;  %v1308_v46 = vld [vmem:[#allocation2 + $0x1a4] ss:$16 sps:$4 sm:$0xff]  }
  0x2c   :  { %v1310_v47 = vld [vmem:[#allocation2 + $0x1ac] ss:$16 sps:$4 sm:$0xff]   ;;  %v1312_v48 = vld [vmem:[#allocation2 + $0x1a0] ss:$16 sps:$4 sm:$0xff]   ;;  %v1313_v49 = vld [vmem:[#allocation2 + $0x1a8] ss:$16 sps:$4 sm:$0xff]  }
  0x2d   :  { %501 = vmatpush1.bf16.msra.mxu0 %v1270_v20  ;;  %544 = vmatpush1.bf16.msra.mxu1 %v1271_v21  ;;  %v1314_v50 = vld [vmem:[#allocation2 + $0x184] ss:$16 sps:$4 sm:$0xff]   ;;  %v1316_v51 = vld [vmem:[#allocation2 + $0x18c] ss:$16 sps:$4 sm:$0xff]   ;;  %v1318_v52 = vld [vmem:[#allocation2 + $0x180] ss:$16 sps:$4 sm:$0xff]  }
  0x2e   :  { %502 = vmatprep.subr.bf16.mxu0 %v1272_v22  ;;  %545 = vmatprep.subr.bf16.mxu1 %v1274_v23  ;;  %v1319_v53 = vld [vmem:[#allocation2 + $0x188] ss:$16 sps:$4 sm:$0xff]   ;;  %v1320_v54 = vld [vmem:[#allocation2 + $0x164] ss:$16 sps:$4 sm:$0xff]   ;;  %v1322_v55 = vld [vmem:[#allocation2 + $0x16c] ss:$16 sps:$4 sm:$0xff]  }
  0x2f   :  { %v1324_v56 = vld [vmem:[#allocation2 + $0x160] ss:$16 sps:$4 sm:$0xff]   ;;  %v1325_v57 = vld [vmem:[#allocation2 + $0x168] ss:$16 sps:$4 sm:$0xff]   ;;  %v1326_v58 = vld [vmem:[#allocation2 + $0x144] ss:$16 sps:$4 sm:$0xff]  }
  0x30   :  { %v1328_v59 = vld [vmem:[#allocation2 + $0x14c] ss:$16 sps:$4 sm:$0xff]   ;;  %v1330_v60 = vld [vmem:[#allocation2 + $0x140] ss:$16 sps:$4 sm:$0xff]   ;;  %v1331_v61 = vld [vmem:[#allocation2 + $0x148] ss:$16 sps:$4 sm:$0xff]  }
  0x31   :  { %503 = vmatpush1.bf16.msra.mxu0 %v1276_v24  ;;  %546 = vmatpush1.bf16.msra.mxu1 %v1277_v25  ;;  %v1332_v62 = vld [vmem:[#allocation2 + $0x124] ss:$16 sps:$4 sm:$0xff]   ;;  %v1334_v63 = vld [vmem:[#allocation2 + $0x12c] ss:$16 sps:$4 sm:$0xff]   ;;  %v1336_v0 = vld [vmem:[#allocation2 + $0x120] ss:$16 sps:$4 sm:$0xff]  }
  0x32   :  { %504 = vmatprep.subr.bf16.mxu0 %v1278_v26  ;;  %547 = vmatprep.subr.bf16.mxu1 %v1280_v27  ;;  %v1337_v1 = vld [vmem:[#allocation2 + $0x128] ss:$16 sps:$4 sm:$0xff]   ;;  %v1338_v2 = vld [vmem:[#allocation2 + $0x104] ss:$16 sps:$4 sm:$0xff]   ;;  %v1340_v3 = vld [vmem:[#allocation2 + $0x10c] ss:$16 sps:$4 sm:$0xff]  }
  0x33   :  { %v1342_v4 = vld [vmem:[#allocation2 + $0x100] ss:$16 sps:$4 sm:$0xff]   ;;  %v1343_v5 = vld [vmem:[#allocation2 + $0x108] ss:$16 sps:$4 sm:$0xff]   ;;  %v1346_v6 = vld [vmem:[#allocation5 + $0x74] ss:$8 sps:$4 sm:$0xff]  }
  0x34   :  { %v1349_v7 = vld [vmem:[#allocation5 + $0x174] ss:$8 sps:$4 sm:$0xff]   ;;  %v54_v9 = vand.u32 127, %v53_v8  ;;  %v1344_v15 = vld [vmem:[#allocation5 + $0x70] ss:$8 sps:$4 sm:$0xff]   ;;  %s1515_s11 = smov [#allocation7]  }
  0x35   :  { %505 = vmatpush1.bf16.msra.mxu0 %v1282_v28  ;;  %548 = vmatpush1.bf16.msra.mxu1 %v1283_v29  ;;  %v1347_v16 = vld [vmem:[#allocation5 + $0x170] ss:$8 sps:$4 sm:$0xff]   ;;  %v1352_v17 = vld [vmem:[#allocation5 + $0x64] ss:$8 sps:$4 sm:$0xff]   ;;  %v1514_v19 = vmov 1.0|1.0  }
  0x36   :  { %506 = vmatprep.subr.bf16.mxu0 %v1284_v30  ;;  %549 = vmatprep.subr.bf16.mxu1 %v1286_v31  ;;  %v55_v12 = vadd.s32 128, %v54_v9  ;;  %v1355_v18 = vld [vmem:[#allocation5 + $0x164] ss:$8 sps:$4 sm:$0xff]   ;;  %v1350_v20 = vld [vmem:[#allocation5 + $0x60] ss:$8 sps:$4 sm:$0xff]   ;;  %s1083_s12 = sshll.u32 %s1515_s11, 4  ;;  %s1084_s12 = int_to_ptr.vmem [resolvable:$true] %s1083_s12 }
  0x37   :  { %v1353_v21 = vld [vmem:[#allocation5 + $0x160] ss:$8 sps:$4 sm:$0xff]   ;;  %v1358_v22 = vld [vmem:[#allocation5 + $0x54] ss:$8 sps:$4 sm:$0xff]   ;;  %v1356_v24 = vld [vmem:[#allocation5 + $0x50] ss:$8 sps:$4 sm:$0xff]   ;;  %p1485_p11 = scmp.lt.s32.totalorder %s1084_s12, %s1084_s12 }
  0x38   :  { %v1361_v23 = vld [vmem:[#allocation5 + $0x154] ss:$8 sps:$4 sm:$0xff]   ;;  %v1359_v25 = vld [vmem:[#allocation5 + $0x150] ss:$8 sps:$4 sm:$0xff]   ;;  %v1364_v26 = vld [vmem:[#allocation5 + $0x44] ss:$8 sps:$4 sm:$0xff]  }
  0x39   :  { %507 = vmatpush1.bf16.msra.mxu0 %v1288_v32  ;;  %550 = vmatpush1.bf16.msra.mxu1 %v1289_v33  ;;  %v1367_v27 = vld [vmem:[#allocation5 + $0x144] ss:$8 sps:$4 sm:$0xff]   ;;  %v1362_v28 = vld [vmem:[#allocation5 + $0x40] ss:$8 sps:$4 sm:$0xff]   ;;  %v1370_v30 = vld [vmem:[#allocation5 + $0x34] ss:$8 sps:$4 sm:$0xff]  }
  0x3a   :  { %508 = vmatprep.subr.bf16.mxu0 %v1290_v34  ;;  %551 = vmatprep.subr.bf16.mxu1 %v1292_v35  ;;  %v1365_v29 = vld [vmem:[#allocation5 + $0x140] ss:$8 sps:$4 sm:$0xff]   ;;  %v1373_v31 = vld [vmem:[#allocation5 + $0x134] ss:$8 sps:$4 sm:$0xff]   ;;  %v1368_v32 = vld [vmem:[#allocation5 + $0x30] ss:$8 sps:$4 sm:$0xff]  }
  0x3b   :  { %v1371_v33 = vld [vmem:[#allocation5 + $0x130] ss:$8 sps:$4 sm:$0xff]   ;;  %v1376_v34 = vld [vmem:[#allocation5 + $0x24] ss:$8 sps:$4 sm:$0xff]  }
  0x3c   :  { %v1379_v35 = vld [vmem:[#allocation5 + $0x124] ss:$8 sps:$4 sm:$0xff]  }
  0x3d   :  { %509 = vmatpush1.bf16.msra.mxu0 %v1294_v36  ;;  %552 = vmatpush1.bf16.msra.mxu1 %v1295_v37  ;;  %v1374_v36 = vld [vmem:[#allocation5 + $0x20] ss:$8 sps:$4 sm:$0xff]  }
  0x3e   :  { %510 = vmatprep.subr.bf16.mxu0 %v1296_v38  ;;  %553 = vmatprep.subr.bf16.mxu1 %v1298_v39  ;;  %v1377_v37 = vld [vmem:[#allocation5 + $0x120] ss:$8 sps:$4 sm:$0xff]   ;;  %v1382_v38 = vld [vmem:[#allocation5 + $0x14] ss:$8 sps:$4 sm:$0xff]  }
  0x3f   :  { %v1385_v39 = vld [vmem:[#allocation5 + $0x114] ss:$8 sps:$4 sm:$0xff]  }
  0x41   :  { %511 = vmatpush2.bf16.msra.mxu0 %v1300_v40  ;;  %554 = vmatpush2.bf16.msra.mxu1 %v1301_v41  ;;  %v1380_v40 = vld [vmem:[#allocation5 + $0x10] ss:$8 sps:$4 sm:$0xff]  }
  0x42   :  { %512 = vmatprep.subr.bf16.mxu0 %v1302_v42  ;;  %555 = vmatprep.subr.bf16.mxu1 %v1304_v43  ;;  %v1383_v41 = vld [vmem:[#allocation5 + $0x110] ss:$8 sps:$4 sm:$0xff]   ;;  %v1388_v42 = vld [vmem:[#allocation5 + $0x4] ss:$8 sps:$4 sm:$0xff]  }
  0x43   :  { %v1391_v43 = vld [vmem:[#allocation5 + $0x104] ss:$8 sps:$4 sm:$0xff]  }
  0x45   :  { %513 = vmatpush2.bf16.msra.mxu0 %v1306_v44  ;;  %556 = vmatpush2.bf16.msra.mxu1 %v1307_v45  ;;  %v1386_v44 = vld [vmem:[#allocation5] ss:$8 sps:$4 sm:$0xff]  }
  0x46   :  { %514 = vmatprep.subr.bf16.mxu0 %v1308_v46  ;;  %557 = vmatprep.subr.bf16.mxu1 %v1310_v47  ;;  %v1389_v45 = vld [vmem:[#allocation5 + $0x100] ss:$8 sps:$4 sm:$0xff]   ;;  %v1394_v46 = vld [vmem:[#allocation5 + $0xf4] ss:$8 sps:$4 sm:$0xff]  }
  0x47   :  { %v1397_v47 = vld [vmem:[#allocation5 + $0x1f4] ss:$8 sps:$4 sm:$0xff]  }
  0x49   :  { %515 = vmatpush2.bf16.msra.mxu0 %v1312_v48  ;;  %558 = vmatpush2.bf16.msra.mxu1 %v1313_v49  ;;  %v1392_v48 = vld [vmem:[#allocation5 + $0xf0] ss:$8 sps:$4 sm:$0xff]  }
  0x4a   :  { %516 = vmatprep.subr.bf16.mxu0 %v1314_v50  ;;  %559 = vmatprep.subr.bf16.mxu1 %v1316_v51  ;;  %v1395_v49 = vld [vmem:[#allocation5 + $0x1f0] ss:$8 sps:$4 sm:$0xff]   ;;  %v1400_v50 = vld [vmem:[#allocation5 + $0xe4] ss:$8 sps:$4 sm:$0xff]  }
  0x4b   :  { %v1403_v51 = vld [vmem:[#allocation5 + $0x1e4] ss:$8 sps:$4 sm:$0xff]  }
  0x4d   :  { %517 = vmatpush2.bf16.msra.mxu0 %v1318_v52  ;;  %560 = vmatpush2.bf16.msra.mxu1 %v1319_v53  ;;  %v1398_v52 = vld [vmem:[#allocation5 + $0xe0] ss:$8 sps:$4 sm:$0xff]  }
  0x4e   :  { %518 = vmatprep.subr.bf16.mxu0 %v1320_v54  ;;  %561 = vmatprep.subr.bf16.mxu1 %v1322_v55  ;;  %v1401_v53 = vld [vmem:[#allocation5 + $0x1e0] ss:$8 sps:$4 sm:$0xff]   ;;  %v1406_v54 = vld [vmem:[#allocation5 + $0xd4] ss:$8 sps:$4 sm:$0xff]  }
  0x4f   :  { %v1409_v55 = vld [vmem:[#allocation5 + $0x1d4] ss:$8 sps:$4 sm:$0xff]  }
  0x51   :  { %519 = vmatpush2.bf16.msra.mxu0 %v1324_v56  ;;  %562 = vmatpush2.bf16.msra.mxu1 %v1325_v57  ;;  %v1404_v56 = vld [vmem:[#allocation5 + $0xd0] ss:$8 sps:$4 sm:$0xff]  }
  0x52   :  { %520 = vmatprep.subr.bf16.mxu0 %v1326_v58  ;;  %563 = vmatprep.subr.bf16.mxu1 %v1328_v59  ;;  %v1407_v57 = vld [vmem:[#allocation5 + $0x1d0] ss:$8 sps:$4 sm:$0xff]   ;;  %v1412_v58 = vld [vmem:[#allocation5 + $0xc4] ss:$8 sps:$4 sm:$0xff]  }
  0x53   :  { %v1415_v59 = vld [vmem:[#allocation5 + $0x1c4] ss:$8 sps:$4 sm:$0xff]  }
  0x55   :  { %521 = vmatpush2.bf16.msra.mxu0 %v1330_v60  ;;  %564 = vmatpush2.bf16.msra.mxu1 %v1331_v61  ;;  %v1410_v60 = vld [vmem:[#allocation5 + $0xc0] ss:$8 sps:$4 sm:$0xff]  }
  0x56   :  { %522 = vmatprep.subr.bf16.mxu0 %v1332_v62  ;;  %565 = vmatprep.subr.bf16.mxu1 %v1334_v63  ;;  %v1413_v61 = vld [vmem:[#allocation5 + $0x1c0] ss:$8 sps:$4 sm:$0xff]   ;;  %v1418_v62 = vld [vmem:[#allocation5 + $0xb4] ss:$8 sps:$4 sm:$0xff]  }
  0x57   :  { %v1421_v63 = vld [vmem:[#allocation5 + $0x1b4] ss:$8 sps:$4 sm:$0xff]  }
  0x59   :  { %523 = vmatpush2.bf16.msra.mxu0 %v1336_v0  ;;  %566 = vmatpush2.bf16.msra.mxu1 %v1337_v1  ;;  %v1416_v0 = vld [vmem:[#allocation5 + $0xb0] ss:$8 sps:$4 sm:$0xff]  }
  0x5a   :  { %524 = vmatprep.subr.bf16.mxu0 %v1338_v2  ;;  %567 = vmatprep.subr.bf16.mxu1 %v1340_v3  ;;  %v1419_v1 = vld [vmem:[#allocation5 + $0x1b0] ss:$8 sps:$4 sm:$0xff]   ;;  %v1424_v2 = vld [vmem:[#allocation5 + $0xa4] ss:$8 sps:$4 sm:$0xff]  }
  0x5b   :  { %v1427_v3 = vld [vmem:[#allocation5 + $0x1a4] ss:$8 sps:$4 sm:$0xff]  }
  0x5d   :  { %525 = vmatpush2.bf16.msra.mxu0 %v1342_v4  ;;  %568 = vmatpush2.bf16.msra.mxu1 %v1343_v5  ;;  %v1422_v4 = vld [vmem:[#allocation5 + $0xa0] ss:$8 sps:$4 sm:$0xff]  }
  0x5e   :  { %988 = vmatprep.subr.bf16.mxu0 %v1346_v6  ;;  %1031 = vmatprep.subr.bf16.mxu1 %v1349_v7  ;;  %v1425_v5 = vld [vmem:[#allocation5 + $0x1a0] ss:$8 sps:$4 sm:$0xff]   ;;  %v1430_v6 = vld [vmem:[#allocation5 + $0x94] ss:$8 sps:$4 sm:$0xff]  }
  0x5f   :  { %v1433_v7 = vld [vmem:[#allocation5 + $0x194] ss:$8 sps:$4 sm:$0xff]  }
  0x9a   :  { %v60_v10 = vpop.permute.xlu1 %59 }
  0x9b   :  { %v66_v11 = vpop.permute.xlu0 %65  ;;  %vm74_vm0 = vcmp.eq.s32.totalorder %v54_v9, %v60_v10  ;;  %v1431_v10 = vld [vmem:[#allocation5 + $0x190] ss:$8 sps:$4 sm:$0xff]  }
  0x9c   :  { %vm75_vm2 = vcmp.eq.s32.totalorder %v55_v12, %v66_v11  ;;  %v1436_v11 = vld [vmem:[#allocation5 + $0x84] ss:$8 sps:$4 sm:$0xff]  }
  0x9e   :  { %v63_v13 = vpop.permute.xlu1 %62 }
  0x9f   :  { %vm76_vm1 = vcmp.eq.s32.totalorder %v54_v9, %v63_v13  ;;  %v69_v14 = vpop.permute.xlu0 %68  ;;  %v1428_v9 = vld [vmem:[#allocation5 + $0x90] ss:$8 sps:$4 sm:$0xff]   ;;  %v1434_v13 = vld [vmem:[#allocation5 + $0x80] ss:$8 sps:$4 sm:$0xff]  }
  0xa0   :  { %vm77_vm3 = vcmp.eq.s32.totalorder %v55_v12, %v69_v14  ;;  %vm1166_vm5 = vmpackc.low %vm76_vm1, %vm74_vm0  ;;  %v1439_v12 = vld [vmem:[#allocation5 + $0x184] ss:$8 sps:$4 sm:$0xff]   ;;  %v1437_v14 = vld [vmem:[#allocation5 + $0x180] ss:$8 sps:$4 sm:$0xff]  }
  0xa1   :  { %vm1164_vm4 = vmpackc.low %vm77_vm3, %vm75_vm2 }
  0xa2   :  { %1165 = vmatprep.mubr.msk.bf16.mxu0 %vm1164_vm4, %v1514_v19  ;;  %1169 = vmatprep.mubr.msk.bf16.mxu1 %vm1164_vm4, %v1514_v19 }
  0xa3   :  { %1167 = vmatmul.mubr.msk.bf16.vlgmr.msra.gmra.mxu0 %vm1166_vm5, %v1514_v19  ;;  %1171 = vmatmul.mubr.msk.bf16.vlgmr.msra.gmra.mxu1 %vm1166_vm5, %v1514_v19 }
  0xa4   :  { %989 = vmatpush1.bf16.msra.mxu0 %v1344_v15  ;;  %1032 = vmatpush1.bf16.msra.mxu1 %v1347_v16  ;;  %v155_v15 = vshrl.u32 %v53_v8, 7 }
  0xa5   :  { %990 = vmatprep.subr.bf16.mxu0 %v1352_v17  ;;  %1033 = vmatprep.subr.bf16.mxu1 %v1355_v18 }
  0xa6   :  { %v160_v16 = vsub.s32 1, %v155_v15  ;;  %v168_v17 = vsub.s32 3, %v155_v15  ;;  %v156_v18 = vsub.s32 0, %v155_v15  ;;  %v164_v19 = vsub.s32 2, %v155_v15 }
  0xa8   :  { %991 = vmatpush1.bf16.msra.mxu0 %v1350_v20  ;;  %1034 = vmatpush1.bf16.msra.mxu1 %v1353_v21  ;;  %v152_v20 = vld [vmem:[%s1577_s2] sm:$0xf] }
  0xa9   :  { %992 = vmatprep.subr.bf16.mxu0 %v1358_v22  ;;  %1035 = vmatprep.subr.bf16.mxu1 %v1361_v23  ;;  %v161_v23 = vrot.slane %v152_v20, %v160_v16 }
  0xac   :  { %993 = vmatpush1.bf16.msra.mxu0 %v1356_v24  ;;  %1036 = vmatpush1.bf16.msra.mxu1 %v1359_v25  ;;  %v169_v24 = vrot.slane %v152_v20, %v168_v17  ;;  %v157_v25 = vrot.slane %v152_v20, %v156_v18 }
  0xad   :  { %994 = vmatprep.subr.bf16.mxu0 %v1364_v26  ;;  %1037 = vmatprep.subr.bf16.mxu1 %v1367_v27  ;;  %v165_v26 = vrot.slane %v152_v20, %v164_v19 }
  0xb0   :  { %995 = vmatpush1.bf16.msra.mxu0 %v1362_v28  ;;  %1038 = vmatpush1.bf16.msra.mxu1 %v1365_v29 }
  0xb1   :  { %996 = vmatprep.subr.bf16.mxu0 %v1370_v30  ;;  %1039 = vmatprep.subr.bf16.mxu1 %v1373_v31 }
  0xb4   :  { %997 = vmatpush1.bf16.msra.mxu0 %v1368_v32  ;;  %1040 = vmatpush1.bf16.msra.mxu1 %v1371_v33 }
  0xb5   :  { %998 = vmatprep.subr.bf16.mxu0 %v1376_v34  ;;  %1041 = vmatprep.subr.bf16.mxu1 %v1379_v35 }
  0xb8   :  { %999 = vmatpush1.bf16.msra.mxu0 %v1374_v36  ;;  %1042 = vmatpush1.bf16.msra.mxu1 %v1377_v37 }
  0xb9   :  { %1000 = vmatprep.subr.bf16.mxu0 %v1382_v38  ;;  %1043 = vmatprep.subr.bf16.mxu1 %v1385_v39 }
  0xbc   :  { %1001 = vmatpush1.bf16.msra.mxu0 %v1380_v40  ;;  %1044 = vmatpush1.bf16.msra.mxu1 %v1383_v41 }
  0xbd   :  { %1002 = vmatprep.subr.bf16.mxu0 %v1388_v42  ;;  %1045 = vmatprep.subr.bf16.mxu1 %v1391_v43 }
  0xc0   :  { %1003 = vmatpush1.bf16.msra.mxu0 %v1386_v44  ;;  %1046 = vmatpush1.bf16.msra.mxu1 %v1389_v45 }
  0xc1   :  { %1004 = vmatprep.subr.bf16.mxu0 %v1394_v46  ;;  %1047 = vmatprep.subr.bf16.mxu1 %v1397_v47 }
  0xc4   :  { %1005 = vmatpush2.bf16.msra.mxu0 %v1392_v48  ;;  %1048 = vmatpush2.bf16.msra.mxu1 %v1395_v49 }
  0xc5   :  { %1006 = vmatprep.subr.bf16.mxu0 %v1400_v50  ;;  %1049 = vmatprep.subr.bf16.mxu1 %v1403_v51 }
  0xc8   :  { %1007 = vmatpush2.bf16.msra.mxu0 %v1398_v52  ;;  %1050 = vmatpush2.bf16.msra.mxu1 %v1401_v53  ;;  %v656_v52 = vld [vmem:[%s1579_s4] sm:$0x3]  ;;  %s1480_s4 = scalar_lea.vmem %s1084_s12, 512 }
  0xc9   :  { %1008 = vmatprep.subr.bf16.mxu0 %v1406_v54  ;;  %1051 = vmatprep.subr.bf16.mxu1 %v1409_v55  ;;  %v661_v53 = vrot.slane %v656_v52, %v156_v18  ;;  %v665_v54 = vrot.slane %v656_v52, %v160_v16  ;;  %p1481_p10 = scmp.ne.s32.totalorder %s1084_s12, %s1480_s4  ;;  %p1486_p12 = scmp.lt.s32.totalorder %s1480_s4, %s1480_s4 }
  0xcb   :  { %p1487_p13 = por %p1486_p12, %p1485_p11 }
  0xcc   :  { %1009 = vmatpush2.bf16.msra.mxu0 %v1404_v56  ;;  %1052 = vmatpush2.bf16.msra.mxu1 %v1407_v57 }
  0xcd   :  { %1010 = vmatprep.subr.bf16.mxu0 %v1412_v58  ;;  %1053 = vmatprep.subr.bf16.mxu1 %v1415_v59  ;;  %p1488_p0 = pnand %p1487_p13, %p1481_p10 }
  0xd0   :  { %1011 = vmatpush2.bf16.msra.mxu0 %v1410_v60  ;;  %1054 = vmatpush2.bf16.msra.mxu1 %v1413_v61 }
  0xd1   :  { %1012 = vmatprep.subr.bf16.mxu0 %v1418_v62  ;;  %1055 = vmatprep.subr.bf16.mxu1 %v1421_v63 }
  0xd4   :  { %1013 = vmatpush2.bf16.msra.mxu0 %v1416_v0  ;;  %1056 = vmatpush2.bf16.msra.mxu1 %v1419_v1 }
  0xd5   :  { %1014 = vmatprep.subr.bf16.mxu0 %v1424_v2  ;;  %1057 = vmatprep.subr.bf16.mxu1 %v1427_v3 }
  0xd8   :  { %1015 = vmatpush2.bf16.msra.mxu0 %v1422_v4  ;;  %1058 = vmatpush2.bf16.msra.mxu1 %v1425_v5 }
  0xd9   :  { %1016 = vmatprep.subr.bf16.mxu0 %v1430_v6  ;;  %1059 = vmatprep.subr.bf16.mxu1 %v1433_v7 }
  0xdc   :  { %1017 = vmatpush2.bf16.msra.mxu0 %v1428_v9  ;;  %1060 = vmatpush2.bf16.msra.mxu1 %v1431_v10 }
  0xdd   :  { %1018 = vmatprep.subr.bf16.mxu0 %v1436_v11  ;;  %1061 = vmatprep.subr.bf16.mxu1 %v1439_v12 }
  0xe0   :  { %1019 = vmatpush2.bf16.msra.mxu0 %v1434_v13  ;;  %1062 = vmatpush2.bf16.msra.mxu1 %v1437_v14 }
 0x163   :  { %v528_v21 = vpop.f32.mrf.mxu0  ;;  %v571_v22 = vpop.f32.mrf.mxu1 }
 0x164   :  { %v529_v34 = vadd.f32 %v528_v21, %v157_v25  ;;  %v572_v35 = vadd.f32 %v571_v22, %v165_v26 }
 0x165   :  { %v530_v27 = vpop.f32.mrf.mxu0  ;;  %v573_v28 = vpop.f32.mrf.mxu1 }
 0x166   :  { %v531_v31 = vadd.f32 %v530_v27, %v161_v23  ;;  %v574_v8 = vadd.f32 %v573_v28, %v169_v24  ;;  %v580_v46 = vmax.f32 %v529_v34, 0.0  ;;  %v582_v47 = vmax.f32 %v572_v35, 0.0 }
 0x167   :  { %v532_v29 = vpop.f32.mrf.mxu0  ;;  %v575_v30 = vpop.f32.mrf.mxu1 }
 0x168   :  { %v533_v32 = vadd.f32 %v532_v29, %v157_v25  ;;  %v576_v33 = vadd.f32 %v575_v30, %v165_v26  ;;  %v581_v42 = vmax.f32 %v531_v31, 0.0  ;;  %v583_v43 = vmax.f32 %v574_v8, 0.0 }
 0x169   :  { %v534_v36 = vpop.f32.mrf.mxu0  ;;  %v577_v37 = vpop.f32.mrf.mxu1 }
 0x16a   :  { %v535_v38 = vadd.f32 %v534_v36, %v161_v23  ;;  %v578_v39 = vadd.f32 %v577_v37, %v169_v24  ;;  %v584_v40 = vmax.f32 %v533_v32, 0.0  ;;  %v586_v41 = vmax.f32 %v576_v33, 0.0 }
 0x16c   :  { %v585_v44 = vmax.f32 %v535_v38, 0.0  ;;  %v587_v45 = vmax.f32 %v578_v39, 0.0  ;;  %v588_v50 = vpack.c.bf16 %v584_v40, %v580_v46  ;;  %v590_v51 = vpack.c.bf16 %v586_v41, %v582_v47 }
 0x16e   :  { %v589_v48 = vpack.c.bf16 %v585_v44, %v581_v42  ;;  %v591_v49 = vpack.c.bf16 %v587_v45, %v583_v43 }
 0x170   :  { %1020 = vmatprep.mubr.bf16.mxu0 %v589_v48  ;;  %1063 = vmatprep.mubr.bf16.mxu1 %v591_v49 }
 0x171   :  { %1021 = vmatmul.mubr.bf16.vlgmr.msra.gmra.mxu0 %v588_v50  ;;  %1064 = vmatmul.mubr.bf16.vlgmr.msra.gmra.mxu1 %v590_v51 }
 0x231   :  { %v1022_v55 = vpop.f32.mrf.mxu0  ;;  %v1065_v56 = vpop.f32.mrf.mxu1 }
 0x232   :  { %v1023_v57 = vadd.f32 %v1022_v55, %v661_v53 }
 0x233   :  { %v1024_v58 = vpop.f32.mrf.mxu0  ;;  %v1067_v59 = vpop.f32.mrf.mxu1 }
 0x234   :  { %v1066_v60 = vadd.f32 %v1065_v56, %v1023_v57  ;;  %v1025_v61 = vadd.f32 %v1024_v58, %v665_v54 }
 0x235   :  { %v1026_v62 = vpop.f32.mrf.mxu0  ;;  %v1069_v63 = vpop.f32.mrf.mxu1 }
 0x236   :  { %1074 = vst [vmem:[#allocation7] sm:$0xff] %v1066_v60  ;;  %v1068_v0 = vadd.f32 %v1067_v59, %v1025_v61  ;;  %v1027_v1 = vadd.f32 %v1026_v62, %v661_v53 }
 0x237   :  { %v1028_v2 = vpop.f32.mrf.mxu0  ;;  %v1071_v5 = vpop.f32.mrf.mxu1 }
 0x238   :  { %1075 = vst [vmem:[#allocation7 + $0x8] sm:$0xff] %v1068_v0  ;;  %v1070_v3 = vadd.f32 %v1069_v63, %v1027_v1  ;;  %v1029_v4 = vadd.f32 %v1028_v2, %v665_v54 }
 0x23a   :  { %1076 = vst [vmem:[#allocation7 + $0x10] sm:$0xff] %v1070_v3  ;;  %v1072_v6 = vadd.f32 %v1071_v5, %v1029_v4 }
 0x23c   :  { %1077 = vst [vmem:[#allocation7 + $0x18] sm:$0xff] %v1072_v6 }
 0x23d   :  { %1491 = shalt.err (!%p1488_p0)
}
 0x23e   :  { %1089 = dma.vmem_to_hbm [thread:$0]  %s1084_s12, 512, %s1580_s5, [#allocation4], %s1507_s21, %s1507_s21, %s1508_s22  }
 0x23f   :  { %1504 = dma.done.wait [#allocation4], 512  }
 0x240   :  { %1505 = vsyncadd [#allocation4], 4294966784 }
 0x241   :  { %1093 = vsyncpa [#allocation3], 1 }
 0x242   :  { %1094 = vsyncpa [#allocation6], 1 }
 0x243   :  { %1095 = vsyncpa [#allocation4], 1 }

</bundles_post_ra>
